<compile_context>
chip_gen: v7x
topology: tpu7x:2x2x1
jax: 0.10.0
libtpu: 0.0.40
codegen_flags: <defaults>
</compile_context>

<pallas_src>
import jax
import jax.numpy as jnp
from jax.experimental import pallas as pl
from jax.experimental.pallas import tpu as pltpu

FINAL_DIM = 16
INPUT_SIZE = FINAL_DIM * 2
HIDDEN_SIZE = 32
NUM_CLASS = 8
DROPOUT_RATE = 0.5       # eval mode -> dropout is identity
BLANCE_VAL = 0.3         # stands in for the undefined self.lamda_val
BN_EPS = 1e-5
BATCH = 8

# Packed-parameter row layout (every row is HIDDEN_SIZE = 32 lanes wide).
# All separately-sliced regions start on an 8-sublane boundary.
W1A_ROW = 0                       # rows [0, 16)   : W1' rows for cnn input
W1B_ROW = FINAL_DIM               # rows [16, 32)  : W1' rows for rnn input
W2_ROW = INPUT_SIZE               # rows [32, 64)  : W2, cols 8..31 zero-padded
B1_ROW = W2_ROW + HIDDEN_SIZE     # row 64         : b1' (BN folded)
B2_ROW = B1_ROW + 8               # row 72         : b2, cols 8..31 zero
PACK_ROWS = B2_ROW + 8            # 80 rows total

# TODO(synk): the original forward references self.lamda_val which is never
# defined in __init__ (only blance_val); BLANCE_VAL is used as that lambda and
# is folded into W1 at pack time on the assumption it is a static config value.
# TODO(synk): dropout only implemented for eval (training=False); a training
# variant would need pltpu.prng_seed / prng_random_bits masking.


# --------------------------------------------------------------------------
# Kernel
# --------------------------------------------------------------------------
def fullconnect_kernel(cnn_ref, rnn_ref, p_ref, out_ref):
    # Parameter views (all 8-sublane aligned, full 32-lane width -> views).
    w1a = p_ref[W1A_ROW:W1A_ROW + FINAL_DIM, :]          # (16, 32)
    w1b = p_ref[W1B_ROW:W1B_ROW + FINAL_DIM, :]          # (16, 32)
    w2p = p_ref[W2_ROW:W2_ROW + HIDDEN_SIZE, :]          # (32, 32), cols 8..31 = 0
    b1 = p_ref[B1_ROW:B1_ROW + 1, :]                     # (1, 32)
    b2p = p_ref[B2_ROW:B2_ROW + 1, :]                    # (1, 32), cols 8..31 = 0

    # Linear1 (+ folded BatchNorm + folded lambda) as two accumulating MXU
    # dots -- no in-kernel concat / cross-lane repack.
    h = jnp.dot(cnn_ref[...], w1a, preferred_element_type=jnp.float32)
    h = h + jnp.dot(rnn_ref[...], w1b, preferred_element_type=jnp.float32)
    h = jnp.maximum(h + b1, 0.0)
    # Dropout: eval mode -> identity.

    # Linear2 against the 32-lane zero-padded W2, then drop the pad lanes.
    logits = jnp.dot(h, w2p, preferred_element_type=jnp.float32) + b2p
    logits = logits[:, :NUM_CLASS]                        # (tb, 8)

    # Numerically stable softmax.  Exact reciprocal (VALU divide path; VALU
    # has plenty of slack at 8-lane width).  approx=True alone would violate
    # the 1e-5 tolerance vs. the f32 reference.
    m = jnp.max(logits, axis=1, keepdims=True)
    e = jnp.exp(logits - m)
    inv = pl.reciprocal(jnp.sum(e, axis=1, keepdims=True), approx=False)
    out_ref[...] = (e * inv).astype(out_ref.dtype)


# --------------------------------------------------------------------------
# Tile selection / wrapper
# --------------------------------------------------------------------------
def _round_up(x, m):
    return ((x + m - 1) // m) * m


def _pick_block_batch(B, max_block_batch):
    """Batch-row tile. Single full-extent block for small B; otherwise at
    least two (even count) grid steps so v7x's two TensorCores split the
    stream, capped so the lane-padded double-buffered footprint fits VMEM."""
    if B <= 2048:
        return B
    steps = max(2, pl.cdiv(B, max_block_batch))
    if steps % 2:
        steps += 1
    return _round_up(pl.cdiv(B, steps), 8)


def _xla_forward_packed(cnn, rnn, p):
    """Plain-XLA path for tiny batches (same math as the kernel)."""
    h = (cnn @ p[W1A_ROW:W1A_ROW + FINAL_DIM]
         + rnn @ p[W1B_ROW:W1B_ROW + FINAL_DIM]
         + p[B1_ROW])
    h = jnp.maximum(h, 0.0)
    logits = h @ p[W2_ROW:W2_ROW + HIDDEN_SIZE, :NUM_CLASS] + p[B2_ROW, :NUM_CLASS]
    return jax.nn.softmax(logits, axis=1)


def fullconnect_forward(cnn_att_vec, rnn_att_vec, packed_params, *,
                        max_block_batch=8192, min_pallas_batch=512,
                        force_pallas=False):
    B = cnn_att_vec.shape[0]
    if B < min_pallas_batch and not force_pallas:
        # Below ~512 rows the pallas_call is pure launch + single-step
        # overhead; a fused XLA graph wins.
        return _xla_forward_packed(cnn_att_vec, rnn_att_vec, packed_params)

    tb = _pick_block_batch(B, max_block_batch)
    grid = (pl.cdiv(B, tb),)
    return pl.pallas_call(
        fullconnect_kernel,
        out_shape=jax.ShapeDtypeStruct((B, NUM_CLASS), jnp.float32),
        grid=grid,
        in_specs=[
            pl.BlockSpec((tb, FINAL_DIM), lambda i: (i, 0)),
            pl.BlockSpec((tb, FINAL_DIM), lambda i: (i, 0)),
            # Parameters: constant block index -> stays resident across steps.
            pl.BlockSpec((PACK_ROWS, HIDDEN_SIZE), lambda i: (0, 0)),
        ],
        out_specs=pl.BlockSpec((tb, NUM_CLASS), lambda i: (i, 0)),
        compiler_params=pltpu.CompilerParams(
            dimension_semantics=("parallel",),
            # Covers the lane-padded double-buffered footprint (~24 MiB at
            # tb=8192) on v5e (16 MiB default scoped) with headroom; still
            # below v7x's 64 MiB physical VMEM.
            vmem_limit_bytes=40 * 1024 * 1024,
        ),
    )(cnn_att_vec, rnn_att_vec, packed_params)


# --------------------------------------------------------------------------
# Parameter prep (one-time, off the per-call path)
# --------------------------------------------------------------------------
def init_params(key):
    """Raw PyTorch-style parameters (nn.Linear default-like init; BatchNorm
    defaults gamma=1, beta=0, running_mean=0, running_var=1).  Weights are
    stored transposed (in, out) so the kernel does x @ W directly."""
    k1, k2, k3, k4 = jax.random.split(key, 4)
    bound1 = 1.0 / jnp.sqrt(INPUT_SIZE)
    bound2 = 1.0 / jnp.sqrt(HIDDEN_SIZE)
    return {
        "w1": jax.random.uniform(k1, (INPUT_SIZE, HIDDEN_SIZE), jnp.float32,
                                 -bound1, bound1),
        "b1": jax.random.uniform(k2, (HIDDEN_SIZE,), jnp.float32,
                                 -bound1, bound1),
        "w2": jax.random.uniform(k3, (HIDDEN_SIZE, NUM_CLASS), jnp.float32,
                                 -bound2, bound2),
        "b2": jax.random.uniform(k4, (NUM_CLASS,), jnp.float32,
                                 -bound2, bound2),
        "gamma": jnp.ones((HIDDEN_SIZE,), jnp.float32),
        "beta": jnp.zeros((HIDDEN_SIZE,), jnp.float32),
        "mean": jnp.zeros((HIDDEN_SIZE,), jnp.float32),
        "var": jnp.ones((HIDDEN_SIZE,), jnp.float32),
    }


def pack_params(raw, lam=BLANCE_VAL, eps=BN_EPS):
    """Fold eval BatchNorm and the static lambda into W1/b1 and pack all
    parameters into a single 8-sublane-aligned (80, 32) operand."""
    scale = raw["gamma"] / jnp.sqrt(raw["var"] + eps)          # (HIDDEN,)
    w1_bn = raw["w1"] * scale[None, :]
    b1_bn = (raw["b1"] - raw["mean"]) * scale + raw["beta"]
    w1_fold = jnp.concatenate(
        [lam * w1_bn[:FINAL_DIM], (1.0 - lam) * w1_bn[FINAL_DIM:]], axis=0)

    packed = jnp.zeros((PACK_ROWS, HIDDEN_SIZE), jnp.float32)
    packed = packed.at[W1A_ROW:W1A_ROW + INPUT_SIZE, :].set(w1_fold)
    packed = packed.at[W2_ROW:W2_ROW + HIDDEN_SIZE, 0:NUM_CLASS].set(raw["w2"])
    packed = packed.at[B1_ROW, :].set(b1_bn)
    packed = packed.at[B2_ROW, 0:NUM_CLASS].set(raw["b2"])
    return packed


def reference_forward(cnn, rnn, raw, lam=BLANCE_VAL, eps=BN_EPS):
    """Pure-JAX mirror of the original (unfolded) module math, eval mode."""
    x = jnp.concatenate([lam * cnn, (1.0 - lam) * rnn], axis=1)
    h = x @ raw["w1"] + raw["b1"]
    h = (h - raw["mean"]) / jnp.sqrt(raw["var"] + eps)
    h = h * raw["gamma"] + raw["beta"]
    h = jnp.maximum(h, 0.0)
    logits = h @ raw["w2"] + raw["b2"]
    return jax.nn.softmax(logits, axis=1)


# --------------------------------------------------------------------------
# Test
# --------------------------------------------------------------------------
if __name__ == "__main__":
    key = jax.random.PRNGKey(0)
    kp, ka, kb, kc, kd = jax.random.split(key, 5)

    raw = init_params(kp)
    packed = pack_params(raw)

    # Small-shape test (force the Pallas path; normally B < 512 -> XLA).
    cnn_att_vec = jax.random.normal(ka, (BATCH, FINAL_DIM), jnp.float32)
    rnn_att_vec = jax.random.normal(kb, (BATCH, FINAL_DIM), jnp.float32)
    out = fullconnect_forward(cnn_att_vec, rnn_att_vec, packed,
                              force_pallas=True)
    out = jax.block_until_ready(out)
    ref = reference_forward(cnn_att_vec, rnn_att_vec, raw)
    assert out.shape == (BATCH, NUM_CLASS)
    assert jnp.allclose(jnp.sum(out, axis=1), 1.0, atol=1e-5)
    assert jnp.allclose(out, ref, atol=1e-5, rtol=1e-5)

    # Exercise the multi-step tiled path (grid=2, padded tail block).
    B2 = 2056
    cnn2 = jax.random.normal(kc, (B2, FINAL_DIM), jnp.float32)
    rnn2 = jax.random.normal(kd, (B2, FINAL_DIM), jnp.float32)
    out2 = jax.block_until_ready(fullconnect_forward(cnn2, rnn2, packed))
    ref2 = reference_forward(cnn2, rnn2, raw)
    assert out2.shape == (B2, NUM_CLASS)
    assert jnp.allclose(out2, ref2, atol=1e-5, rtol=1e-5)

    print("KERNEL_OK")
</pallas_src>

<mosaic_0001>
module attributes {stable_mosaic.version = 11 : i64} {
  func.func @fullconnect_kernel(%arg0: i32, %arg1: memref<8x16xf32, #tpu.memory_space<vmem>>, %arg2: memref<8x16xf32, #tpu.memory_space<vmem>>, %arg3: memref<80x32xf32, #tpu.memory_space<vmem>>, %arg4: memref<8x8xf32, #tpu.memory_space<vmem>>) attributes {dimension_semantics = [#tpu.dimension_semantics<parallel>], iteration_bounds = array<i64: 1>, scalar_prefetch = 0 : i64, scratch_operands = 0 : i64, tpu.core_type = #tpu.core_type<tc>, window_params = [{transform_indices = @transform_0, window_bounds = array<i64: 8, 16>}, {transform_indices = @transform_1, window_bounds = array<i64: 8, 16>}, {pipeline_mode = #tpu.pipeline_mode<synchronous>, transform_indices = @transform_2, window_bounds = array<i64: 80, 32>}, {transform_indices = @transform_3, window_bounds = array<i64: 8, 8>}]} {
    %c0 = arith.constant 0 : index
    %c0_0 = arith.constant 0 : index
    %0 = vector.load %arg3[%c0, %c0_0] : memref<80x32xf32, #tpu.memory_space<vmem>>, vector<16x32xf32>
    %c16 = arith.constant 16 : index
    %c0_1 = arith.constant 0 : index
    %1 = vector.load %arg3[%c16, %c0_1] : memref<80x32xf32, #tpu.memory_space<vmem>>, vector<16x32xf32>
    %c32 = arith.constant 32 : index
    %c0_2 = arith.constant 0 : index
    %2 = vector.load %arg3[%c32, %c0_2] : memref<80x32xf32, #tpu.memory_space<vmem>>, vector<32x32xf32>
    %c64 = arith.constant 64 : index
    %c0_3 = arith.constant 0 : index
    %3 = vector.load %arg3[%c64, %c0_3] : memref<80x32xf32, #tpu.memory_space<vmem>>, vector<1x32xf32>
    %c72 = arith.constant 72 : index
    %c0_4 = arith.constant 0 : index
    %4 = vector.load %arg3[%c72, %c0_4] : memref<80x32xf32, #tpu.memory_space<vmem>>, vector<1x32xf32>
    %c0_5 = arith.constant 0 : index
    %c0_6 = arith.constant 0 : index
    %5 = vector.load %arg1[%c0_5, %c0_6] : memref<8x16xf32, #tpu.memory_space<vmem>>, vector<8x16xf32>
    %cst = arith.constant dense<0.000000e+00> : vector<8x32xf32>
    %6 = tpu.matmul %5, %0, %cst {dimension_numbers = #tpu.dot_dimension_numbers<[1], [0], [0], [1], [0, 0, 1, 1], [], []>} : vector<8x16xf32>, vector<16x32xf32>, vector<8x32xf32> -> vector<8x32xf32>
    %c0_7 = arith.constant 0 : index
    %c0_8 = arith.constant 0 : index
    %7 = vector.load %arg2[%c0_7, %c0_8] : memref<8x16xf32, #tpu.memory_space<vmem>>, vector<8x16xf32>
    %cst_9 = arith.constant dense<0.000000e+00> : vector<8x32xf32>
    %8 = tpu.matmul %7, %1, %cst_9 {dimension_numbers = #tpu.dot_dimension_numbers<[1], [0], [0], [1], [0, 0, 1, 1], [], []>} : vector<8x16xf32>, vector<16x32xf32>, vector<8x32xf32> -> vector<8x32xf32>
    %9 = arith.addf %6, %8 : vector<8x32xf32>
    %10 = vector.broadcast %3 : vector<1x32xf32> to vector<8x32xf32>
    %11 = arith.addf %9, %10 : vector<8x32xf32>
    %cst_10 = arith.constant 0.000000e+00 : f32
    %12 = vector.broadcast %cst_10 : f32 to vector<8x32xf32>
    %13 = arith.maximumf %11, %12 : vector<8x32xf32>
    %cst_11 = arith.constant dense<0.000000e+00> : vector<8x32xf32>
    %14 = tpu.matmul %13, %2, %cst_11 {dimension_numbers = #tpu.dot_dimension_numbers<[1], [0], [0], [1], [0, 0, 1, 1], [], []>} : vector<8x32xf32>, vector<32x32xf32>, vector<8x32xf32> -> vector<8x32xf32>
    %15 = vector.broadcast %4 : vector<1x32xf32> to vector<8x32xf32>
    %16 = arith.addf %14, %15 : vector<8x32xf32>
    %17 = vector.extract_strided_slice %16 {offsets = [0, 0], sizes = [8, 8], strides = [1, 1]} : vector<8x32xf32> to vector<8x8xf32>
    %cst_12 = arith.constant dense<0xFF800000> : vector<8xf32>
    %18 = vector.multi_reduction <maximumf>, %17, %cst_12 [1] : vector<8x8xf32> to vector<8xf32>
    %19 = vector.shape_cast %18 : vector<8xf32> to vector<8x1xf32>
    %20 = vector.broadcast %19 : vector<8x1xf32> to vector<8x8xf32>
    %21 = arith.subf %17, %20 : vector<8x8xf32>
    %22 = math.exp %21 : vector<8x8xf32>
    %cst_13 = arith.constant dense<0.000000e+00> : vector<8xf32>
    %23 = vector.multi_reduction <add>, %22, %cst_13 [1] : vector<8x8xf32> to vector<8xf32>
    %24 = vector.shape_cast %23 : vector<8xf32> to vector<8x1xf32>
    %25 = tpu.reciprocal %24 : vector<8x1xf32> -> vector<8x1xf32>
    %26 = vector.broadcast %25 : vector<8x1xf32> to vector<8x8xf32>
    %27 = arith.mulf %22, %26 : vector<8x8xf32>
    %c0_14 = arith.constant 0 : index
    %c0_15 = arith.constant 0 : index
    %28 = vector.load %arg4[%c0_14, %c0_15] : memref<8x8xf32, #tpu.memory_space<vmem>>, vector<8x8xf32>
    tpu.vector_store %arg4[%c0_14, %c0_15], %27 {strides = array<i32>} : memref<8x8xf32, #tpu.memory_space<vmem>>, vector<8x8xf32>,
    return
  }
  func.func @transform_0(%arg0: i32) -> (i32, i32) {
    %c0_i32 = arith.constant 0 : i32
    %c0_i32_0 = arith.constant 0 : i32
    return %arg0, %c0_i32 : i32, i32
  }
  func.func @transform_1(%arg0: i32) -> (i32, i32) {
    %c0_i32 = arith.constant 0 : i32
    %c0_i32_0 = arith.constant 0 : i32
    return %arg0, %c0_i32 : i32, i32
  }
  func.func @transform_2(%arg0: i32) -> (i32, i32) {
    %c0_i32 = arith.constant 0 : i32
    %c0_i32_0 = arith.constant 0 : i32
    %c0_i32_1 = arith.constant 0 : i32
    return %c0_i32, %c0_i32_0 : i32, i32
  }
  func.func @transform_3(%arg0: i32) -> (i32, i32) {
    %c0_i32 = arith.constant 0 : i32
    %c0_i32_0 = arith.constant 0 : i32
    return %arg0, %c0_i32 : i32, i32
  }
}

</mosaic_0001>

<bundles_post_ra>
// kernel: tpu_custom_call.1
= control target key start
LH: loop header
LB: loop body
LE: loop exit
PB: predicated region body
PF: predicated region fallthrough
CT: control target
= control target key end

     0   :  { %v370_v2 = vmov 0.0|0.0   ;;  %vm371_vm0 = vmmov 0   ;;  %v372_v4 = vmov 0.0   ;;  %s445_s0 = inlined_call_operand.vmem [shape: f32[8,16], index: 0, kind: input, shape index: {}]   ;;  %s446_s1 = inlined_call_operand.vmem [shape: f32[8,16], index: 1, kind: input, shape index: {}]   ;;  %s447_s2 = inlined_call_operand.vmem [shape: f32[80,32], index: 2, kind: input, shape index: {}]   ;;  %s448_s3 = inlined_call_operand.hbm [shape: f32[8,8], index: 3, kind: output, shape index: {}]  }
   0x1   :  { %v17_v0 = vld [vmem:[%s447_s2 + $0x10] sm:$0xff]  ;;  %v18_v1 = vld [vmem:[%s447_s2 + $0x18] sm:$0xff]  ;;  %326 = vmatprep.subr.bf16.mxu1 %v370_v2  ;;  %305 = vmatprep.mubr.msk.f32.mxu1 %vm371_vm0, %v372_v4  ;;  %v15_v5 = vld [vmem:[%s447_s2] sm:$0xff] }
   0x2   :  { %v327_v3 = vpack.c.bf16 %v18_v1, %v17_v0  ;;  %v16_v6 = vld [vmem:[%s447_s2 + $0x8] sm:$0xff]  ;;  %332 = vmatprep.subr.bf16.mxu0 %v370_v2  ;;  %323 = vmatprep.mubr.msk.f32.mxu0 %vm371_vm0, %v372_v4 }
   0x3   :  { %8 = vsyncpa [#allocation3], 0  ;;  %v26_v7 = vld [vmem:[%s446_s1] sm:$0xff]  ;;  %vm27_vm1 = vcmask 130048   ;;  %v330_v8 = vpack.c.bf16 %v16_v6, %v15_v5  ;;  %v20_v11 = vld [vmem:[%s447_s2 + $0x28] sm:$0xff]  ;;  %vm184_vm2 = vcmask 261120  }
   0x4   :  { %328 = vmatpush3.bf16.msra.mxu1 %v327_v3  ;;  %v25_v9 = vld [vmem:[%s445_s0] sm:$0xff]  ;;  %v21_v13 = vld [vmem:[%s447_s2 + $0x30] sm:$0xff]  ;;  %v22_v14 = vld [vmem:[%s447_s2 + $0x38] sm:$0xff]  ;;  %vm258_vm3 = vcmask 64512   ;;  %s373_s7 = smov [#allocation2]  }
   0x5   :  { %329 = vmatprep.subr.bf16.mxu1 %v370_v2  ;;  %v19_v10 = vld [vmem:[%s447_s2 + $0x20] sm:$0xff]  ;;  %v336_v15 = vpack.c.bf16 %v22_v14, %v21_v13  ;;  %v288_v24 = vld [vmem:[%s447_s2 + $0x48] ss:$0 sm:$0xff]  ;;  %s277_s8 = sshll.u32 %s373_s7, 4  ;;  %s278_s8 = int_to_ptr.vmem [resolvable:$true] %s277_s8 }
   0x6   :  { %v333_v12 = vpack.c.bf16 %v20_v11, %v19_v10  ;;  %v287_v18 = vld [vmem:[%s447_s2 + $0x40] ss:$0 sm:$0xff]  ;;  %s346_s2 = scalar_lea.vmem %s278_s8, 128  ;;  %p351_p1 = scmp.lt.s32.totalorder %s278_s8, %s278_s8 }
   0x7   :  { %306 = vmatmul.mubr.msk.f32.vlgmr.msra.gmra.mrb[0].mxu1 %vm27_vm1, %v26_v7  ;;  %p347_p0 = scmp.ne.s32.totalorder %s278_s8, %s346_s2  ;;  %p352_p2 = scmp.lt.s32.totalorder %s346_s2, %s346_s2 }
   0x8   :  { %331 = vmatpush3.bf16.msra.mxu1 %v330_v8  ;;  %312 = vmatprep.mubr.msk.f32.mxu1 %vm371_vm0, %v372_v4 }
   0x9   :  { %334 = vmatpush3.bf16.msra.mxu0 %v333_v12  ;;  %p353_p3 = por %p352_p2, %p351_p1 }
   0xa   :  { %335 = vmatprep.subr.bf16.mxu0 %v370_v2 }
   0xb   :  { %313 = vmatmul.mubr.msk.f32.vlgmr.msra.gmra.mrb[2].mxu1 %vm27_vm1, %v25_v9  ;;  %p354_p4 = pnand %p353_p3, %p347_p0 }
   0xd   :  { %337 = vmatpush3.bf16.msra.mxu0 %v336_v15 }
  0xda   :  { %v97_v16 = vpop.f32.mrb[0].mxu1 }
  0xdb   :  { %v307_v17 = vpop.f32.mrb[1].mxu1 }
  0xde   :  { %v170_v19 = vpop.f32.mrb[2].mxu1 }
  0xdf   :  { %v171_v20 = vadd.f32 %v170_v19, %v97_v16  ;;  %v314_v21 = vpop.f32.mrb[3].mxu1 }
  0xe1   :  { %v178_v22 = vadd.f32 %v287_v18, %v171_v20 }
  0xe3   :  { %v179_v23 = vmax.f32 %v178_v22, 0.0 }
  0xe5   :  { %324 = vmatmul.mubr.msk.f32.vlgmr.msra.gmra.mrb[0].mxu0 %vm184_vm2, %v179_v23 }
 0x1b8   :  { %v254_v25 = vpop.f32.mrb[0].mxu0 }
 0x1b9   :  { %v255_v26 = vadd.f32 %v288_v24, %v254_v25  ;;  %v325_v27 = vpop.f32.mrb[1].mxu0 }
 0x1bb   :  { %v259_v28 = vsel %vm258_vm3, %v255_v26, -inf }
 0x1bc   :  { %260 = vmax.xlane.f32.xlu0 %v259_v28 }
 0x249   :  { %v261_v29 = vpop.xlane.xlu0 %260 }
 0x24a   :  { %v262_v30 = vsub.f32 %v255_v26, %v261_v29 }
 0x24c   :  { %v263_v31 = vmul.f32 1.442695, %v262_v30 }
 0x24e   :  { %342 = vpow2.f32 %v263_v31 }
 0x258   :  { %v343_v32 = vpop.eup %342 }
 0x259   :  { %v265_v33 = vsel %vm258_vm3, %v343_v32, 0.0 }
 0x25a   :  { %266 = vadd.xlane.f32.xlu0 %v265_v33 }
 0x2e7   :  { %v267_v34 = vpop.xlane.xlu0 %266 }
 0x2e8   :  { %344 = vrcp.f32 %v267_v34 }
 0x2f2   :  { %v345_v35 = vpop.eup %344 }
 0x2f3   :  { %v269_v36 = vmul.f32 %v345_v35, %v343_v32 }
 0x2f5   :  { %270 = vst.msk [vmem:[#allocation2] sm:$0xff] %vm258_vm3, %v269_v36 }
 0x2f6   :  { %357 = shalt.err (!%p354_p4)
}
 0x2f7   :  { %s358_s11 = scalar_lea.hbm %s448_s3, 128 }
 0x2f8   :  { %p359_p5 = scmp.ne.s32.totalorder %s448_s3, %s358_s11  ;;  %p362_p6 = scmp.lt.u32.totalorder %s358_s11, %s448_s3 }
 0x2fa   :  { %p364_p7 = pnand %p362_p6, %p359_p5 }
 0x2fc   :  { %367 = shalt.err (!%p364_p7)
}
 0x2fd   :  { %280 = dma.vmem_to_hbm [thread:$0]  %s278_s8, 128, %s448_s3, [#allocation3]  }
 0x2fe   :  { %368 = dma.done.wait [#allocation3], 128  }
 0x2ff   :  { %369 = vsyncadd [#allocation3], 4294967168 }
 0x300   :  { %284 = vsyncpa [#allocation3], 1 }

</bundles_post_ra>
